<compile_context>
chip_gen: v5e
topology: v5e:2x2
jax: 0.10.0
libtpu: 0.0.40
codegen_flags: <defaults>
</compile_context>

<pallas_src>
import functools

import jax
import jax.numpy as jnp
from jax.experimental import pallas as pl
from jax.experimental.pallas import tpu as pltpu

_MAX_LANE = 1024                    # max lane-dense tile width (multiple of 128)
_TARGET_TILE_BYTES = 4 * 1024 * 1024  # ~4 MiB tiles -> ~16 MiB double-buffered pipeline


def _cdiv(a, b):
    return -(-a // b)


def _activation_kernel(x_ref, o_ref, *, act_type, negative_slope):
    x = x_ref[...]
    if act_type == "leakyrelu":
        if 0.0 <= negative_slope <= 1.0:
            # max(x, s*x) == x for x>=0, s*x for x<0 when 0<=s<=1 (2 VALU ops).
            y = jnp.maximum(x, x * negative_slope)
        else:
            y = jnp.where(x >= 0, x, x * negative_slope)
    elif act_type == "relu":
        y = jnp.maximum(x, jnp.zeros_like(x))
    else:  # "silu": x * sigmoid(x); sigmoid via tanh -> single EUP op per element.
        xf = x.astype(jnp.float32)
        y = xf * (0.5 * jnp.tanh(0.5 * xf) + 0.5)
    o_ref[...] = y.astype(o_ref.dtype)


def activation_block(x, act_type="leakyrelu", negative_slope=0.1, inplace=False):
    """Pallas equivalent of ActivationBlock.forward (elementwise activation).

    `inplace=True` adds input_output_aliases={0: 0}; it is only copy-free if the caller
    donates the input buffer at the jit boundary (otherwise XLA inserts a defensive copy).
    """
    assert act_type in ("silu", "relu", "leakyrelu"), "Unsupport activation function!"
    shape, dtype = x.shape, x.dtype
    n = int(x.size)
    if n == 0:
        return x

    itemsize = jnp.dtype(dtype).itemsize
    sub = max(8, 32 // itemsize)  # native sublane multiple: 8 f32, 16 bf16, 32 int8/fp8

    # Lane width: largest 128-multiple divisor of n (capped) so the reshape is a free
    # bitcast; otherwise fall back to the rare ragged pad path.
    ragged = (n % 128 != 0)
    if ragged:
        lane = 128
    else:
        m = n // 128
        lane = 128
        for cand in range(min(_MAX_LANE // 128, m), 0, -1):
            if m % cand == 0:
                lane = 128 * cand
                break

    rows = _cdiv(n, lane)
    # Row tile: target ~4 MiB tiles, rounded to the dtype's sublane multiple.
    rows_cap = max(sub, (_TARGET_TILE_BYTES // (lane * itemsize)) // sub * sub)
    tm = min(rows_cap, _cdiv(rows, sub) * sub)
    n_blocks = _cdiv(rows, tm)  # partial final block is masked by Pallas; no row padding.

    flat = jnp.reshape(x, (-1,))
    if ragged:
        # Rare ragged fallback (element count not a multiple of 128): zero-pad, slice after.
        flat = jnp.pad(flat, (0, rows * lane - n))
    x2 = flat.reshape(rows, lane)

    kernel = functools.partial(
        _activation_kernel, act_type=act_type, negative_slope=negative_slope
    )

    out2 = pl.pallas_call(
        kernel,
        out_shape=jax.ShapeDtypeStruct((rows, lane), dtype),
        grid=(n_blocks,),
        in_specs=[pl.BlockSpec((tm, lane), lambda i: (i, 0))],
        out_specs=pl.BlockSpec((tm, lane), lambda i: (i, 0)),
        input_output_aliases=({0: 0} if inplace else {}),
        compiler_params=pltpu.CompilerParams(
            dimension_semantics=("parallel",),     # v7x dual-TC sharding; no-op on v5e/v6e
            vmem_limit_bytes=32 * 1024 * 1024,     # 4 MiB tiles -> ~16 MiB pipeline; safe on all gens
        ),
        cost_estimate=pl.CostEstimate(
            flops=2 * n,
            transcendentals=n if act_type == "silu" else 0,
            bytes_accessed=2 * n * itemsize,
        ),
    )(x2)

    if ragged:
        return out2.reshape(-1)[:n].reshape(shape)
    return out2.reshape(shape)  # free bitcast: rows * lane == n


if __name__ == "__main__":
    key = jax.random.PRNGKey(0)
    x = jax.random.normal(key, (2, 4, 16, 16), jnp.float32)  # NCHW, like the PyTorch module

    # LeakyReLU(0.1) — the darknet default.
    fwd_lrelu = jax.jit(
        functools.partial(activation_block, act_type="leakyrelu", negative_slope=0.1)
    )
    out = jax.block_until_ready(fwd_lrelu(x))
    ref = jnp.where(x >= 0, x, 0.1 * x)
    assert out.shape == x.shape and out.dtype == x.dtype
    assert jnp.allclose(out, ref, atol=1e-6, rtol=1e-6)

    # ReLU.
    out_relu = jax.block_until_ready(
        jax.jit(functools.partial(activation_block, act_type="relu"))(x)
    )
    assert jnp.allclose(out_relu, jnp.maximum(x, 0.0), atol=1e-6, rtol=1e-6)

    # SiLU (tanh formulation vs jax.nn.silu reference).
    out_silu = jax.block_until_ready(
        jax.jit(functools.partial(activation_block, act_type="silu"))(x)
    )
    assert jnp.allclose(out_silu, jax.nn.silu(x), atol=1e-5, rtol=1e-5)

    # Ragged shape (element count not a multiple of 128) exercises the pad fallback.
    xr = jax.random.normal(jax.random.PRNGKey(1), (2, 3, 7, 7), jnp.float32)
    out_r = jax.block_until_ready(fwd_lrelu(xr))
    assert jnp.allclose(out_r, jnp.where(xr >= 0, xr, 0.1 * xr), atol=1e-6, rtol=1e-6)

    print("KERNEL_OK")
</pallas_src>

<mosaic_0001>
module attributes {stable_mosaic.version = 11 : i64} {
  func.func @_activation_kernel(%arg0: i32, %arg1: memref<8x1024xf32, #tpu.memory_space<vmem>>, %arg2: memref<8x1024xf32, #tpu.memory_space<vmem>>) attributes {dimension_semantics = [#tpu.dimension_semantics<parallel>], iteration_bounds = array<i64: 1>, scalar_prefetch = 0 : i64, scratch_operands = 0 : i64, tpu.core_type = #tpu.core_type<tc>, window_params = [{transform_indices = @transform_0, window_bounds = array<i64: 8, 1024>}, {transform_indices = @transform_1, window_bounds = array<i64: 8, 1024>}]} {
    %c0 = arith.constant 0 : index
    %c0_0 = arith.constant 0 : index
    %0 = vector.load %arg1[%c0, %c0_0] : memref<8x1024xf32, #tpu.memory_space<vmem>>, vector<8x1024xf32>
    %cst = arith.constant 1.000000e-01 : f32
    %1 = vector.broadcast %cst : f32 to vector<8x1024xf32>
    %2 = arith.mulf %0, %1 : vector<8x1024xf32>
    %3 = arith.maximumf %0, %2 : vector<8x1024xf32>
    %c0_1 = arith.constant 0 : index
    %c0_2 = arith.constant 0 : index
    %4 = vector.load %arg2[%c0_1, %c0_2] : memref<8x1024xf32, #tpu.memory_space<vmem>>, vector<8x1024xf32>
    tpu.vector_store %arg2[%c0_1, %c0_2], %3 {strides = array<i32>} : memref<8x1024xf32, #tpu.memory_space<vmem>>, vector<8x1024xf32>,
    return
  }
  func.func @transform_0(%arg0: i32) -> (i32, i32) {
    %c0_i32 = arith.constant 0 : i32
    %c0_i32_0 = arith.constant 0 : i32
    return %arg0, %c0_i32 : i32, i32
  }
  func.func @transform_1(%arg0: i32) -> (i32, i32) {
    %c0_i32 = arith.constant 0 : i32
    %c0_i32_0 = arith.constant 0 : i32
    return %arg0, %c0_i32 : i32, i32
  }
}

</mosaic_0001>

<bundles_post_ra>
// kernel: activation_block.1
= control target key start
LH: loop header
LB: loop body
LE: loop exit
PB: predicated region body
PF: predicated region fallthrough
CT: control target
= control target key end

     0   :  { %s89_s0 = inlined_call_operand.vmem [shape: f32[2,1024], index: 0, kind: input, shape index: {}]   ;;  %s90_s1 = inlined_call_operand.vmem [shape: f32[2,1024], index: 1, kind: output, shape index: {}]  }
   0x1   :  { %v8_v0 = vld [vmem:[%s89_s0] sm:$0xff]  ;;  %v9_v1 = vld [vmem:[%s89_s0 + $0x8] sm:$0xff] }
   0x2   :  { %v16_v2 = vmul.f32 0.1, %v8_v0  ;;  %v17_v3 = vmul.f32 0.1, %v9_v1 }
   0x4   :  { %v24_v4 = vmax.f32 %v8_v0, %v16_v2  ;;  %v25_v5 = vmax.f32 %v9_v1, %v17_v3 }
   0x6   :  { %55 = vst [vmem:[%s90_s1] sm:$0xff] %v24_v4 }
   0x7   :  { %57 = vst [vmem:[%s90_s1 + $0x8] sm:$0xff] %v25_v5 }

</bundles_post_ra>
